<compile_context>
chip_gen: v7x
topology: tpu7x:2x2x1
jax: 0.10.0
libtpu: 0.0.40
codegen_flags: <defaults>
</compile_context>

<pallas_src>
import functools

import jax
import jax.numpy as jnp
from jax.experimental import pallas as pl
from jax.experimental.pallas import tpu as pltpu


# ----------------------------- Pallas kernel ------------------------------ #

def _fair_critic_kernel(*refs, num_hidden_layers: int):
    """Fused MLP forward on one batch tile.

    refs layout (in order):
      score_ref, a_ref,
      w0s_ref, w0a_ref, b0_ref,            # first layer (concat folded in)
      [wh_ref, bh_ref] * num_hidden_layers # hidden Linear+ReLU blocks
      w_out_ref, b_out_ref,                # final Linear (no activation)
      o_ref                                # output (TB, 1)
    """
    score_ref, a_ref = refs[0], refs[1]
    w0s_ref, w0a_ref, b0_ref = refs[2], refs[3], refs[4]
    idx = 5

    # Layer 0: h = relu(score @ W_s + a @ W_a + b0)   (no concat needed)
    h = jnp.dot(score_ref[...], w0s_ref[...], preferred_element_type=jnp.float32)
    h = h + jnp.dot(a_ref[...], w0a_ref[...], preferred_element_type=jnp.float32)
    h = jnp.maximum(h + b0_ref[...], 0.0)

    # Hidden blocks: h = relu(h @ W + b)
    for _ in range(num_hidden_layers):
        w_ref, b_ref = refs[idx], refs[idx + 1]
        idx += 2
        h = jnp.dot(h, w_ref[...], preferred_element_type=jnp.float32) + b_ref[...]
        h = jnp.maximum(h, 0.0)

    # Output layer: y = h @ W_out + b_out   (no activation)
    w_out_ref, b_out_ref, o_ref = refs[idx], refs[idx + 1], refs[idx + 2]
    y = jnp.dot(h, w_out_ref[...], preferred_element_type=jnp.float32) + b_out_ref[...]
    o_ref[...] = y.astype(o_ref.dtype)


def fair_critic_forward(params, score, a, *, max_batch_tile: int = 512):
    """Equivalent of FairCritic.forward with activation_fn='relu'.

    params: list of (w, b) with w: (din, dout) = PyTorch W.T, b: (1, dout).
    score: (B, score_dim) f32, a: (B, a_dim) f32  ->  (B, 1) f32.
    """
    B, score_dim = score.shape
    a_dim = a.shape[1]
    num_hidden_layers = len(params) - 2

    # Split first-layer weight so the concat never materializes.
    w0, b0 = params[0]
    w0s = w0[:score_dim, :]
    w0a = w0[score_dim:, :]

    # Batch tile: whole batch if small, else 512-row tiles (multiple of 8).
    tb = B if B <= max_batch_tile else max_batch_tile
    grid = (pl.cdiv(B, tb),)

    def act_spec(d):
        return pl.BlockSpec((tb, d), lambda i: (i, 0))

    def full_spec(arr):
        # Same (full-array) block for every grid step -> loaded once, resident.
        return pl.BlockSpec(arr.shape, lambda i: (0, 0))

    inputs = [score, a, w0s, w0a, b0]
    in_specs = [act_spec(score_dim), act_spec(a_dim),
                full_spec(w0s), full_spec(w0a), full_spec(b0)]
    for (w, b) in params[1:]:
        inputs += [w, b]
        in_specs += [full_spec(w), full_spec(b)]

    kern = functools.partial(_fair_critic_kernel,
                             num_hidden_layers=num_hidden_layers)
    return pl.pallas_call(
        kern,
        out_shape=jax.ShapeDtypeStruct((B, 1), score.dtype),
        grid=grid,
        in_specs=in_specs,
        out_specs=pl.BlockSpec((tb, 1), lambda i: (i, 0)),
        compiler_params=pltpu.CompilerParams(
            dimension_semantics=("parallel",)),
    )(*inputs)


# --------------------------- parameter init -------------------------------- #

def init_fair_critic_params(key, input_dim, hidden_dim, hidden_layers):
    """Deterministic PyTorch-Linear-style init (uniform +- 1/sqrt(fan_in))."""
    dims = [(input_dim, hidden_dim)] \
         + [(hidden_dim, hidden_dim)] * hidden_layers \
         + [(hidden_dim, 1)]
    params = []
    for (din, dout) in dims:
        key, kw, kb = jax.random.split(key, 3)
        bound = 1.0 / jnp.sqrt(jnp.float32(din))
        w = jax.random.uniform(kw, (din, dout), jnp.float32, -bound, bound)
        b = jax.random.uniform(kb, (1, dout), jnp.float32, -bound, bound)
        params.append((w, b))
    return params


# Pure-JAX reference for sanity checking.
def fair_critic_ref(params, score, a):
    x = jnp.concatenate((score, a), axis=-1)
    n_layers = len(params)
    for li, (w, b) in enumerate(params):
        x = jnp.dot(x, w, preferred_element_type=jnp.float32) + b
        if li != n_layers - 1:
            x = jnp.maximum(x, 0.0)
    return x


# --------------------------------- main ----------------------------------- #

if __name__ == "__main__":
    key = jax.random.PRNGKey(0)

    # Small shapes consistent with the module's forward:
    # score: (B, 8), a: (B, 8)  =>  input_dim = 16, hidden_dim = 32, 2 hidden blocks
    B = 8
    score_dim, a_dim = 8, 8
    input_dim = score_dim + a_dim
    hidden_dim = 32
    hidden_layers = 2

    kp, ks, ka = jax.random.split(key, 3)
    params = init_fair_critic_params(kp, input_dim, hidden_dim, hidden_layers)
    score = jax.random.normal(ks, (B, score_dim), jnp.float32)
    a = jax.random.normal(ka, (B, a_dim), jnp.float32)

    out = jax.block_until_ready(fair_critic_forward(params, score, a))
    ref = jax.block_until_ready(fair_critic_ref(params, score, a))
    assert out.shape == (B, 1), out.shape
    assert jnp.allclose(out, ref, atol=1e-5, rtol=1e-5), (out, ref)

    # Also exercise the batch-tiled path (multiple grid steps, "parallel" axis).
    B2 = 48
    ks2, ka2 = jax.random.split(jax.random.PRNGKey(1), 2)
    score2 = jax.random.normal(ks2, (B2, score_dim), jnp.float32)
    a2 = jax.random.normal(ka2, (B2, a_dim), jnp.float32)
    out2 = jax.block_until_ready(
        fair_critic_forward(params, score2, a2, max_batch_tile=16))
    ref2 = jax.block_until_ready(fair_critic_ref(params, score2, a2))
    assert out2.shape == (B2, 1), out2.shape
    assert jnp.allclose(out2, ref2, atol=1e-5, rtol=1e-5), (out2, ref2)

    print("KERNEL_OK")
</pallas_src>

<mosaic_0001>
module attributes {stable_mosaic.version = 11 : i64} {
  func.func @_fair_critic_kernel(%arg0: i32, %arg1: memref<8x8xf32, #tpu.memory_space<vmem>>, %arg2: memref<8x8xf32, #tpu.memory_space<vmem>>, %arg3: memref<8x32xf32, #tpu.memory_space<vmem>>, %arg4: memref<8x32xf32, #tpu.memory_space<vmem>>, %arg5: memref<1x32xf32, #tpu.memory_space<vmem>>, %arg6: memref<32x32xf32, #tpu.memory_space<vmem>>, %arg7: memref<1x32xf32, #tpu.memory_space<vmem>>, %arg8: memref<32x32xf32, #tpu.memory_space<vmem>>, %arg9: memref<1x32xf32, #tpu.memory_space<vmem>>, %arg10: memref<32x1xf32, #tpu.memory_space<vmem>>, %arg11: memref<1x1xf32, #tpu.memory_space<vmem>>, %arg12: memref<8x1xf32, #tpu.memory_space<vmem>>) attributes {dimension_semantics = [#tpu.dimension_semantics<parallel>], iteration_bounds = array<i64: 1>, scalar_prefetch = 0 : i64, scratch_operands = 0 : i64, tpu.core_type = #tpu.core_type<tc>, window_params = [{transform_indices = @transform_0, window_bounds = array<i64: 8, 8>}, {transform_indices = @transform_1, window_bounds = array<i64: 8, 8>}, {pipeline_mode = #tpu.pipeline_mode<synchronous>, transform_indices = @transform_2, window_bounds = array<i64: 8, 32>}, {pipeline_mode = #tpu.pipeline_mode<synchronous>, transform_indices = @transform_3, window_bounds = array<i64: 8, 32>}, {pipeline_mode = #tpu.pipeline_mode<synchronous>, transform_indices = @transform_4, window_bounds = array<i64: 1, 32>}, {pipeline_mode = #tpu.pipeline_mode<synchronous>, transform_indices = @transform_5, window_bounds = array<i64: 32, 32>}, {pipeline_mode = #tpu.pipeline_mode<synchronous>, transform_indices = @transform_6, window_bounds = array<i64: 1, 32>}, {pipeline_mode = #tpu.pipeline_mode<synchronous>, transform_indices = @transform_7, window_bounds = array<i64: 32, 32>}, {pipeline_mode = #tpu.pipeline_mode<synchronous>, transform_indices = @transform_8, window_bounds = array<i64: 1, 32>}, {pipeline_mode = #tpu.pipeline_mode<synchronous>, transform_indices = @transform_9, window_bounds = array<i64: 32, 1>}, {pipeline_mode = #tpu.pipeline_mode<synchronous>, transform_indices = @transform_10, window_bounds = array<i64: 1, 1>}, {transform_indices = @transform_11, window_bounds = array<i64: 8, 1>}]} {
    %c0 = arith.constant 0 : index
    %c0_0 = arith.constant 0 : index
    %0 = vector.load %arg1[%c0, %c0_0] : memref<8x8xf32, #tpu.memory_space<vmem>>, vector<8x8xf32>
    %c0_1 = arith.constant 0 : index
    %c0_2 = arith.constant 0 : index
    %1 = vector.load %arg3[%c0_1, %c0_2] : memref<8x32xf32, #tpu.memory_space<vmem>>, vector<8x32xf32>
    %cst = arith.constant dense<0.000000e+00> : vector<8x32xf32>
    %2 = tpu.matmul %0, %1, %cst {dimension_numbers = #tpu.dot_dimension_numbers<[1], [0], [0], [1], [0, 0, 1, 1], [], []>} : vector<8x8xf32>, vector<8x32xf32>, vector<8x32xf32> -> vector<8x32xf32>
    %c0_3 = arith.constant 0 : index
    %c0_4 = arith.constant 0 : index
    %3 = vector.load %arg2[%c0_3, %c0_4] : memref<8x8xf32, #tpu.memory_space<vmem>>, vector<8x8xf32>
    %c0_5 = arith.constant 0 : index
    %c0_6 = arith.constant 0 : index
    %4 = vector.load %arg4[%c0_5, %c0_6] : memref<8x32xf32, #tpu.memory_space<vmem>>, vector<8x32xf32>
    %cst_7 = arith.constant dense<0.000000e+00> : vector<8x32xf32>
    %5 = tpu.matmul %3, %4, %cst_7 {dimension_numbers = #tpu.dot_dimension_numbers<[1], [0], [0], [1], [0, 0, 1, 1], [], []>} : vector<8x8xf32>, vector<8x32xf32>, vector<8x32xf32> -> vector<8x32xf32>
    %6 = arith.addf %2, %5 : vector<8x32xf32>
    %c0_8 = arith.constant 0 : index
    %c0_9 = arith.constant 0 : index
    %7 = vector.load %arg5[%c0_8, %c0_9] : memref<1x32xf32, #tpu.memory_space<vmem>>, vector<1x32xf32>
    %8 = vector.broadcast %7 : vector<1x32xf32> to vector<8x32xf32>
    %9 = arith.addf %6, %8 : vector<8x32xf32>
    %cst_10 = arith.constant 0.000000e+00 : f32
    %10 = vector.broadcast %cst_10 : f32 to vector<8x32xf32>
    %11 = arith.maximumf %9, %10 : vector<8x32xf32>
    %c0_11 = arith.constant 0 : index
    %c0_12 = arith.constant 0 : index
    %12 = vector.load %arg6[%c0_11, %c0_12] : memref<32x32xf32, #tpu.memory_space<vmem>>, vector<32x32xf32>
    %cst_13 = arith.constant dense<0.000000e+00> : vector<8x32xf32>
    %13 = tpu.matmul %11, %12, %cst_13 {dimension_numbers = #tpu.dot_dimension_numbers<[1], [0], [0], [1], [0, 0, 1, 1], [], []>} : vector<8x32xf32>, vector<32x32xf32>, vector<8x32xf32> -> vector<8x32xf32>
    %c0_14 = arith.constant 0 : index
    %c0_15 = arith.constant 0 : index
    %14 = vector.load %arg7[%c0_14, %c0_15] : memref<1x32xf32, #tpu.memory_space<vmem>>, vector<1x32xf32>
    %15 = vector.broadcast %14 : vector<1x32xf32> to vector<8x32xf32>
    %16 = arith.addf %13, %15 : vector<8x32xf32>
    %cst_16 = arith.constant 0.000000e+00 : f32
    %17 = vector.broadcast %cst_16 : f32 to vector<8x32xf32>
    %18 = arith.maximumf %16, %17 : vector<8x32xf32>
    %c0_17 = arith.constant 0 : index
    %c0_18 = arith.constant 0 : index
    %19 = vector.load %arg8[%c0_17, %c0_18] : memref<32x32xf32, #tpu.memory_space<vmem>>, vector<32x32xf32>
    %cst_19 = arith.constant dense<0.000000e+00> : vector<8x32xf32>
    %20 = tpu.matmul %18, %19, %cst_19 {dimension_numbers = #tpu.dot_dimension_numbers<[1], [0], [0], [1], [0, 0, 1, 1], [], []>} : vector<8x32xf32>, vector<32x32xf32>, vector<8x32xf32> -> vector<8x32xf32>
    %c0_20 = arith.constant 0 : index
    %c0_21 = arith.constant 0 : index
    %21 = vector.load %arg9[%c0_20, %c0_21] : memref<1x32xf32, #tpu.memory_space<vmem>>, vector<1x32xf32>
    %22 = vector.broadcast %21 : vector<1x32xf32> to vector<8x32xf32>
    %23 = arith.addf %20, %22 : vector<8x32xf32>
    %cst_22 = arith.constant 0.000000e+00 : f32
    %24 = vector.broadcast %cst_22 : f32 to vector<8x32xf32>
    %25 = arith.maximumf %23, %24 : vector<8x32xf32>
    %c0_23 = arith.constant 0 : index
    %c0_24 = arith.constant 0 : index
    %26 = vector.load %arg10[%c0_23, %c0_24] : memref<32x1xf32, #tpu.memory_space<vmem>>, vector<32x1xf32>
    %cst_25 = arith.constant dense<0.000000e+00> : vector<8x1xf32>
    %27 = tpu.matmul %25, %26, %cst_25 {dimension_numbers = #tpu.dot_dimension_numbers<[1], [0], [0], [1], [0, 0, 1, 1], [], []>} : vector<8x32xf32>, vector<32x1xf32>, vector<8x1xf32> -> vector<8x1xf32>
    %c0_26 = arith.constant 0 : index
    %c0_27 = arith.constant 0 : index
    %28 = vector.load %arg11[%c0_26, %c0_27] : memref<1x1xf32, #tpu.memory_space<vmem>>, vector<1x1xf32>
    %29 = vector.broadcast %28 : vector<1x1xf32> to vector<8x1xf32>
    %30 = arith.addf %27, %29 : vector<8x1xf32>
    %c0_28 = arith.constant 0 : index
    %c0_29 = arith.constant 0 : index
    %31 = vector.load %arg12[%c0_28, %c0_29] : memref<8x1xf32, #tpu.memory_space<vmem>>, vector<8x1xf32>
    tpu.vector_store %arg12[%c0_28, %c0_29], %30 {strides = array<i32>} : memref<8x1xf32, #tpu.memory_space<vmem>>, vector<8x1xf32>,
    return
  }
  func.func @transform_0(%arg0: i32) -> (i32, i32) {
    %c0_i32 = arith.constant 0 : i32
    %c0_i32_0 = arith.constant 0 : i32
    return %arg0, %c0_i32 : i32, i32
  }
  func.func @transform_1(%arg0: i32) -> (i32, i32) {
    %c0_i32 = arith.constant 0 : i32
    %c0_i32_0 = arith.constant 0 : i32
    return %arg0, %c0_i32 : i32, i32
  }
  func.func @transform_2(%arg0: i32) -> (i32, i32) {
    %c0_i32 = arith.constant 0 : i32
    %c0_i32_0 = arith.constant 0 : i32
    %c0_i32_1 = arith.constant 0 : i32
    return %c0_i32, %c0_i32_0 : i32, i32
  }
  func.func @transform_3(%arg0: i32) -> (i32, i32) {
    %c0_i32 = arith.constant 0 : i32
    %c0_i32_0 = arith.constant 0 : i32
    %c0_i32_1 = arith.constant 0 : i32
    return %c0_i32, %c0_i32_0 : i32, i32
  }
  func.func @transform_4(%arg0: i32) -> (i32, i32) {
    %c0_i32 = arith.constant 0 : i32
    %c0_i32_0 = arith.constant 0 : i32
    %c0_i32_1 = arith.constant 0 : i32
    return %c0_i32, %c0_i32_0 : i32, i32
  }
  func.func @transform_5(%arg0: i32) -> (i32, i32) {
    %c0_i32 = arith.constant 0 : i32
    %c0_i32_0 = arith.constant 0 : i32
    %c0_i32_1 = arith.constant 0 : i32
    return %c0_i32, %c0_i32_0 : i32, i32
  }
  func.func @transform_6(%arg0: i32) -> (i32, i32) {
    %c0_i32 = arith.constant 0 : i32
    %c0_i32_0 = arith.constant 0 : i32
    %c0_i32_1 = arith.constant 0 : i32
    return %c0_i32, %c0_i32_0 : i32, i32
  }
  func.func @transform_7(%arg0: i32) -> (i32, i32) {
    %c0_i32 = arith.constant 0 : i32
    %c0_i32_0 = arith.constant 0 : i32
    %c0_i32_1 = arith.constant 0 : i32
    return %c0_i32, %c0_i32_0 : i32, i32
  }
  func.func @transform_8(%arg0: i32) -> (i32, i32) {
    %c0_i32 = arith.constant 0 : i32
    %c0_i32_0 = arith.constant 0 : i32
    %c0_i32_1 = arith.constant 0 : i32
    return %c0_i32, %c0_i32_0 : i32, i32
  }
  func.func @transform_9(%arg0: i32) -> (i32, i32) {
    %c0_i32 = arith.constant 0 : i32
    %c0_i32_0 = arith.constant 0 : i32
    %c0_i32_1 = arith.constant 0 : i32
    return %c0_i32, %c0_i32_0 : i32, i32
  }
  func.func @transform_10(%arg0: i32) -> (i32, i32) {
    %c0_i32 = arith.constant 0 : i32
    %c0_i32_0 = arith.constant 0 : i32
    %c0_i32_1 = arith.constant 0 : i32
    return %c0_i32, %c0_i32_0 : i32, i32
  }
  func.func @transform_11(%arg0: i32) -> (i32, i32) {
    %c0_i32 = arith.constant 0 : i32
    %c0_i32_0 = arith.constant 0 : i32
    return %arg0, %c0_i32 : i32, i32
  }
}

</mosaic_0001>

<bundles_post_ra>
// kernel: tpu_custom_call.1
= control target key start
LH: loop header
LB: loop body
LE: loop exit
PB: predicated region body
PF: predicated region fallthrough
CT: control target
= control target key end

     0   :  { %s824_s0 = inlined_call_operand.vmem [shape: f32[8,8], index: 0, kind: input, shape index: {}]   ;;  %s825_s1 = inlined_call_operand.vmem [shape: f32[8,8], index: 1, kind: input, shape index: {}]   ;;  %s826_s2 = inlined_call_operand.hbm [shape: f32[8,32], index: 2, kind: input, shape index: {}]   ;;  %s827_s3 = inlined_call_operand.hbm [shape: f32[8,32], index: 3, kind: input, shape index: {}]   ;;  %s828_s4 = inlined_call_operand.vmem [shape: f32[1,32], index: 4, kind: input, shape index: {}]   ;;  %s829_s5 = inlined_call_operand.vmem [shape: f32[32,32], index: 5, kind: input, shape index: {}]   ;;  %s830_s6 = inlined_call_operand.vmem [shape: f32[1,32], index: 6, kind: input, shape index: {}]   ;;  %s831_s7 = inlined_call_operand.hbm [shape: f32[32,32], index: 7, kind: input, shape index: {}]   ;;  %s832_s8 = inlined_call_operand.vmem [shape: f32[1,32], index: 8, kind: input, shape index: {}]   ;;  %s833_s9 = inlined_call_operand.vmem [shape: f32[32,1], index: 9, kind: input, shape index: {}]   ;;  %s834_s10 = inlined_call_operand.<no memory space> [shape: f32[1,1], index: 10, kind: input, shape index: {}]   ;;  %s835_s11 = inlined_call_operand.vmem [shape: f32[8,1], index: 11, kind: output, shape index: {}]  }
   0x1   :  { %v16_v0 = vstv %s834_s10 }
   0x2   :  { %17 = vst [vmem:[#allocation2] sm:$0x1] %v16_v0 }
   0x3   :  { %18 = vsyncpa [#allocation4], 0 }
   0x4   :  { %19 = vsyncpa [#allocation6], 0  ;;  %s667_s19 = smov [#allocation5]   ;;  %s668_s21 = smov [#allocation3]  }
   0x5   :  { %s40_s20 = sshll.u32 %s667_s19, 4  ;;  %s30_s22 = sshll.u32 %s668_s21, 4  ;;  %s41_s20 = int_to_ptr.vmem [resolvable:$true] %s40_s20  ;;  %s31_s22 = int_to_ptr.vmem [resolvable:$true] %s30_s22 }
   0x6   :  { %s597_s25 = scalar_lea.hbm %s827_s3, 128 }
   0x7   :  { %p598_p0 = scmp.ne.s32.totalorder %s827_s3, %s597_s25  ;;  %p601_p1 = scmp.lt.u32.totalorder %s597_s25, %s827_s3 }
   0x9   :  { %p603_p2 = pnand %p601_p1, %p598_p0 }
   0xb   :  { %606 = shalt.err (!%p603_p2)
}
   0xc   :  { %s607_s10 = scalar_lea.vmem %s41_s20, 128  ;;  %p612_p4 = scmp.lt.s32.totalorder %s41_s20, %s41_s20 }
   0xd   :  { %p608_p3 = scmp.ne.s32.totalorder %s41_s20, %s607_s10  ;;  %p613_p5 = scmp.lt.s32.totalorder %s607_s10, %s607_s10 }
   0xf   :  { %p614_p6 = por %p613_p5, %p612_p4 }
  0x11   :  { %p615_p7 = pnand %p614_p6, %p608_p3 }
  0x13   :  { %618 = shalt.err (!%p615_p7)
}
  0x14   :  { %43 = dma.hbm_to_vmem [thread:$0]  %s827_s3, 128, %s41_s20, [#allocation6]  }
  0x15   :  { %s619_s15 = scalar_lea.hbm %s826_s2, 128 }
  0x16   :  { %p620_p8 = scmp.ne.s32.totalorder %s826_s2, %s619_s15  ;;  %p623_p9 = scmp.lt.u32.totalorder %s619_s15, %s826_s2 }
  0x18   :  { %p625_p10 = pnand %p623_p9, %p620_p8 }
  0x1a   :  { %628 = shalt.err (!%p625_p10)
}
  0x1b   :  { %s629_s21 = scalar_lea.vmem %s31_s22, 128  ;;  %p634_p12 = scmp.lt.s32.totalorder %s31_s22, %s31_s22 }
  0x1c   :  { %p630_p11 = scmp.ne.s32.totalorder %s31_s22, %s629_s21  ;;  %p635_p13 = scmp.lt.s32.totalorder %s629_s21, %s629_s21 }
  0x1e   :  { %p636_p0 = por %p635_p13, %p634_p12 }
  0x20   :  { %p637_p1 = pnand %p636_p0, %p630_p11 }
  0x22   :  { %640 = shalt.err (!%p637_p1)
}
  0x23   :  { %33 = dma.hbm_to_vmem [thread:$0]  %s826_s2, 128, %s31_s22, [#allocation4]  }
  0x24   :  { %s669_s23 = smov [#allocation7]   ;;  %s641_s27 = scalar_lea.hbm %s831_s7, 512 }
  0x25   :  { %s55_s24 = sshll.u32 %s669_s23, 4  ;;  %p642_p2 = scmp.ne.s32.totalorder %s831_s7, %s641_s27  ;;  %s56_s24 = int_to_ptr.vmem [resolvable:$true] %s55_s24 }
  0x26   :  { %p645_p3 = scmp.lt.u32.totalorder %s641_s27, %s831_s7 }
  0x28   :  { %p647_p4 = pnand %p645_p3, %p642_p2 }
  0x2a   :  { %650 = shalt.err (!%p647_p4)
}
  0x2b   :  { %s651_s12 = scalar_lea.vmem %s56_s24, 512  ;;  %p656_p6 = scmp.lt.s32.totalorder %s56_s24, %s56_s24 }
  0x2c   :  { %p652_p5 = scmp.ne.s32.totalorder %s56_s24, %s651_s12  ;;  %p657_p7 = scmp.lt.s32.totalorder %s651_s12, %s651_s12 }
  0x2e   :  { %p658_p8 = por %p657_p7, %p656_p6 }
  0x30   :  { %p659_p9 = pnand %p658_p8, %p652_p5 }
  0x32   :  { %662 = shalt.err (!%p659_p9)
}
  0x33   :  { %s670_s2 = smov 128   ;;  %s671_s22 = smov 8  }
  0x34   :  { %61 = dma.hbm_to_vmem [thread:$0]  %s831_s7, 512, %s56_s24, [#allocation6], %s670_s2, %s670_s2, %s671_s22  }
  0x35   :  { %663 = dma.done.wait [#allocation4], 128  }
  0x36   :  { %664 = vsyncadd [#allocation4], 4294967168 }
  0x37   :  { %665 = dma.done.wait [#allocation6], 640  }
  0x38   :  { %666 = vsyncadd [#allocation6], 4294966656  ;;  %v672_v1 = vmov 0.0   ;;  %vm673_vm0 = vmmov 0   ;;  %vm81_vm1 = vcmask 64512   ;;  %v80_v2 = vld [vmem:[#allocation5] sm:$0xff] }
  0x39   :  { %528 = vmatprep.subr.mxu1 %v672_v1  ;;  %530 = vmatprep.mubr.msk.f32.mxu1 %vm673_vm0, %v672_v1  ;;  %v79_v3 = vld [vmem:[%s825_s1] sm:$0xff]  ;;  %v238_v7 = vld [vmem:[%s829_s5 + $0x8] sm:$0xff]  ;;  %v674_v8 = vmov 0.0|0.0   ;;  %v239_v10 = vld [vmem:[%s829_s5 + $0x10] sm:$0xff]  ;;  %vm248_vm2 = vcmask 261120   ;;  %vm492_vm3 = vcmask 7168  }
  0x3a   :  { %546 = vmatprep.mubr.msk.f32.mxu0 %vm673_vm0, %v672_v1  ;;  %v78_v4 = vld [vmem:[#allocation3] sm:$0xff]  ;;  %529 = vmatpush3.msra.mxu1 %v80_v2  ;;  %v240_v11 = vld [vmem:[%s829_s5 + $0x18] sm:$0xff]  ;;  %v502_v19 = vld [vmem:[%s828_s4] ss:$0 sm:$0xff] }
  0x3b   :  { %531 = vmatmul.mubr.msk.f32.vlgmr.msra.gmra.mrb[0].mxu1 %vm81_vm1, %v79_v3  ;;  %533 = vmatprep.subr.mxu1 %v672_v1  ;;  %v77_v5 = vld [vmem:[%s824_s0] sm:$0xff]  ;;  %v575_v12 = vpack.c.bf16 %v240_v11, %v239_v10  ;;  %v323_v13 = vld [vmem:[#allocation7] sm:$0xff]  ;;  %v326_v25 = vld [vmem:[#allocation7 + $0x18] sm:$0xff] }
  0x3c   :  { %534 = vmatpush3.msra.mxu1 %v78_v4  ;;  %535 = vmatprep.mubr.msk.f32.mxu1 %vm673_vm0, %v672_v1  ;;  %v237_v6 = vld [vmem:[%s829_s5] sm:$0xff]  ;;  %v409_v28 = vld [vmem:[%s833_s9 + $0x8] sm:$0xff]  ;;  %v410_v35 = vld [vmem:[%s833_s9 + $0x10] sm:$0xff] }
  0x3d   :  { %571 = vmatprep.subr.bf16.mxu0 %v674_v8  ;;  %v572_v9 = vpack.c.bf16 %v238_v7, %v237_v6  ;;  %577 = vmatprep.subr.bf16.mxu1 %v674_v8  ;;  %v324_v14 = vld [vmem:[#allocation7 + $0x8] sm:$0xff]  ;;  %v325_v24 = vld [vmem:[#allocation7 + $0x10] sm:$0xff] }
  0x3e   :  { %v578_v15 = vpack.c.bf16 %v324_v14, %v323_v13  ;;  %v581_v26 = vpack.c.bf16 %v326_v25, %v325_v24  ;;  %v408_v27 = vld [vmem:[%s833_s9] sm:$0xff]  ;;  %v411_v36 = vld [vmem:[%s833_s9 + $0x18] sm:$0xff] }
  0x3f   :  { %536 = vmatmul.mubr.msk.f32.vlgmr.msra.gmra.mrb[2].mxu1 %vm81_vm1, %v77_v5  ;;  %573 = vmatpush3.bf16.msra.mxu0 %v572_v9  ;;  %v584_v29 = vpack.c.bf16 %v409_v28, %v408_v27  ;;  %v503_v30 = vld [vmem:[%s830_s6] ss:$0 sm:$0xff]  ;;  %v587_v37 = vpack.c.bf16 %v411_v36, %v410_v35 }
  0x40   :  { %557 = vmatprep.mubr.msk.f32.mxu1 %vm673_vm0, %v672_v1  ;;  %574 = vmatprep.subr.bf16.mxu0 %v674_v8  ;;  %v505_v38 = vld [vmem:[%s832_s8] ss:$0 sm:$0xff] }
  0x41   :  { %579 = vmatpush3.bf16.msra.mxu1 %v578_v15  ;;  %v507_v43 = vld [vmem:[#allocation2] ss:$0 sm:$0xff] }
  0x42   :  { %580 = vmatprep.subr.bf16.mxu1 %v674_v8 }
  0x43   :  { %576 = vmatpush3.bf16.msra.mxu0 %v575_v12 }
  0x44   :  { %583 = vmatprep.subr.bf16.mxu0 %v674_v8 }
  0x45   :  { %582 = vmatpush3.bf16.msra.mxu1 %v581_v26 }
 0x10e   :  { %v151_v16 = vpop.f32.mrb[0].mxu1 }
 0x10f   :  { %v532_v17 = vpop.f32.mrb[1].mxu1 }
 0x112   :  { %v224_v18 = vpop.f32.mrb[2].mxu1 }
 0x113   :  { %v225_v20 = vadd.f32 %v224_v18, %v151_v16  ;;  %v537_v21 = vpop.f32.mrb[3].mxu1 }
 0x115   :  { %v235_v22 = vadd.f32 %v502_v19, %v225_v20 }
 0x117   :  { %v236_v23 = vmax.f32 %v235_v22, 0.0 }
 0x119   :  { %547 = vmatmul.mubr.msk.f32.vlgmr.msra.gmra.mrb[0].mxu0 %vm248_vm2, %v236_v23 }
 0x11a   :  { %568 = vmatprep.mubr.msk.f32.mxu0 %vm673_vm0, %v672_v1  ;;  %585 = vmatpush3.bf16.msra.mxu0 %v584_v29 }
 0x11b   :  { %586 = vmatprep.subr.bf16.mxu0 %v674_v8 }
 0x11e   :  { %588 = vmatpush3.bf16.msra.mxu0 %v587_v37 }
 0x1ec   :  { %v318_v31 = vpop.f32.mrb[0].mxu0 }
 0x1ed   :  { %v319_v32 = vadd.f32 %v503_v30, %v318_v31  ;;  %v548_v33 = vpop.f32.mrb[1].mxu0 }
 0x1ef   :  { %v322_v34 = vmax.f32 %v319_v32, 0.0 }
 0x1f1   :  { %558 = vmatmul.mubr.msk.f32.vlgmr.msra.gmra.mrb[4].mxu1 %vm248_vm2, %v322_v34 }
 0x2c4   :  { %v403_v39 = vpop.f32.mrb[4].mxu1 }
 0x2c5   :  { %v404_v40 = vadd.f32 %v505_v38, %v403_v39  ;;  %v559_v41 = vpop.f32.mrb[5].mxu1 }
 0x2c7   :  { %v407_v42 = vmax.f32 %v404_v40, 0.0 }
 0x2c9   :  { %569 = vmatmul.mubr.msk.f32.vlgmr.msra.gmra.mrb[2].mxu0 %vm248_vm2, %v407_v42 }
 0x39c   :  { %v488_v44 = vpop.f32.mrb[2].mxu0 }
 0x39d   :  { %v489_v45 = vadd.f32 %v507_v43, %v488_v44  ;;  %v570_v46 = vpop.f32.mrb[3].mxu0 }
 0x39f   :  { %493 = vst.msk [vmem:[%s835_s11] sm:$0xff] %vm492_vm3, %v489_v45 }
 0x3a0   :  { %498 = vsyncpa [#allocation4], 1 }
 0x3a1   :  { %499 = vsyncpa [#allocation6], 1 }

</bundles_post_ra>
